<compile_context>
chip_gen: v6e
topology: v6e:2x2x1
jax: 0.10.0
libtpu: 0.0.40
codegen_flags: <defaults>
</compile_context>

<pallas_src>
import functools

import jax
import jax.numpy as jnp
from jax.experimental import pallas as pl
from jax.experimental.pallas import tpu as pltpu


def _round_up(x, m):
    return ((x + m - 1) // m) * m


def _pad_to(x, shape):
    pads = [(0, t - s) for s, t in zip(x.shape, shape)]
    if any(p[1] for p in pads):
        x = jnp.pad(x, pads)
    return x


def _maybe_buffered(shape, index_map, buffers):
    """BlockSpec with explicit buffer depth; falls back if pipeline_mode is unsupported."""
    if buffers is None:
        return pl.BlockSpec(shape, index_map)
    try:
        return pl.BlockSpec(shape, index_map, pipeline_mode=pl.Buffered(buffers))
    except TypeError:  # older JAX without pipeline_mode kwarg
        return pl.BlockSpec(shape, index_map)


def _embedding_extractor_kernel(
    feat_ref,   # (TB, S, Hp)  streamed features (f32, or bf16 when matmul_dtype=bf16)
    wa1_ref,    # (Hp, Hp)     attention Linear-1 weight (in, out), matmul dtype
    wp1_ref,    # (Hp, Hp)     projection Linear-1 weight, matmul dtype
    wp2_ref,    # (Hp, Ep)     projection Linear-2 weight, matmul dtype
    rows_ref,   # (8, Hp) f32  packed rows: [ba1, wa2, bp1, ln_gamma, ln_beta, 0, 0, 0]
    bp2_ref,    # (1, Ep) f32  projection Linear-2 bias
    scal_ref,   # (2,)   f32   SMEM scalars: [attention Linear-2 bias, PReLU slope]
    out_ref,    # (TB, Ep)
    *,
    h_real,
    approx_recip,
):
    TB, S, Hp = feat_ref.shape

    f = feat_ref[...]                      # keep the streamed dtype (no TBxSxHp cast)
    f2 = f.reshape(TB * S, Hp)             # dense M for the MXU

    ba1 = rows_ref[0:1, :]
    wa2 = rows_ref[1:2, :]
    bp1 = rows_ref[2:3, :]
    lnw = rows_ref[3:4, :]
    lnb = rows_ref[4:5, :]

    # ---- attention_layer: Linear -> Tanh ----
    h2 = jnp.tanh(
        jnp.dot(f2, wa1_ref[...], preferred_element_type=jnp.float32) + ba1
    )                                                    # (TB*S, Hp) f32
    h3 = h2.reshape(TB, S, Hp)

    # Linear(H -> 1) as a VPU multiply + lane reduce (no N=1 MXU matmul).
    # Scores kept lane-dense as (TB, S) so softmax max/exp/sum use full vregs.
    scores = jnp.sum(h3 * wa2, axis=-1) + scal_ref[0]    # (TB, S) f32

    # ---- Softmax over S ----
    m = jnp.max(scores, axis=-1, keepdims=True)
    e = jnp.exp(scores - m)
    denom = jnp.sum(e, axis=-1, keepdims=True)
    attn = e * pl.reciprocal(denom, approx=approx_recip)  # (TB, S) f32

    # ---- pooled = sum(attn_weights * features, dim=1), f32 accumulation ----
    pooled = jnp.sum(attn[:, :, None] * f, axis=1)        # (TB, Hp) f32

    # ---- projection_layer: Linear -> LayerNorm -> PReLU -> Linear ----
    p1 = (
        jnp.dot(pooled.astype(wp1_ref.dtype), wp1_ref[...],
                preferred_element_type=jnp.float32)
        + bp1
    )                                                      # (TB, Hp); padded cols are exactly 0

    # LayerNorm statistics over the *real* H columns only.
    inv_h = jnp.float32(1.0 / h_real)
    if h_real == Hp:
        mu = jnp.mean(p1, axis=-1, keepdims=True)
        cen = p1 - mu
    else:
        mu = jnp.sum(p1, axis=-1, keepdims=True) * inv_h   # padded p1 cols are 0
        col = jax.lax.broadcasted_iota(jnp.int32, (1, Hp), 1)
        cen = jnp.where(col < h_real, p1 - mu, 0.0)
    var = jnp.sum(cen * cen, axis=-1, keepdims=True) * inv_h
    ln = cen * jax.lax.rsqrt(var + 1e-5) * lnw + lnb       # padded cols stay 0

    a = scal_ref[1]                                        # PReLU slope
    pr = jnp.where(ln >= 0, ln, a * ln)

    out = (
        jnp.dot(pr.astype(wp2_ref.dtype), wp2_ref[...],
                preferred_element_type=jnp.float32)
        + bp2_ref[...]
    )                                                      # (TB, Ep)
    out_ref[...] = out.astype(out_ref.dtype)


def embedding_extractor(features, params, *, tb=None, matmul_dtype=jnp.float32,
                        feature_buffers=2):
    """features: (B, S, H) float32.  params: dict of weights (see init_params)."""
    B, S, H = features.shape
    E = params["wp2"].shape[1]

    Hp = _round_up(H, 128)   # lane-dense blocks, full MXU K/N tiles
    Ep = _round_up(E, 128)   # unmasked output stores

    mm_dtype = jnp.dtype(matmul_dtype)
    weight_bytes = mm_dtype.itemsize
    # Stream features in the matmul dtype when it is narrower than f32.
    feat_stream_dtype = mm_dtype if weight_bytes < 4 else jnp.dtype(jnp.float32)
    feat_bytes = feat_stream_dtype.itemsize

    # ---- per-generation VMEM budget -> batch tile ----
    try:
        vmem_cap = int(pltpu.get_tpu_info().vmem_capacity_bytes)
    except Exception:
        vmem_cap = 64 * 1024 * 1024           # v7x per-TC VMEM (most conservative)
    vmem_limit = int(vmem_cap * 0.80)

    # Resident (single-buffered) weights + small f32 rows, per TensorCore.
    resident = weight_bytes * (2 * Hp * Hp + Hp * Ep) + 4 * (8 * Hp + 8 * Ep)
    # Per-batch-row VMEM: streamed feature buffers + f32 intermediates
    # (h2 and the attn*features product) + double-buffered output rows.
    per_row = (feature_buffers * S * Hp * feat_bytes
               + 2 * S * Hp * 4
               + 2 * Ep * 4
               + 6 * Hp * 4)
    if tb is None:
        raw = (int(vmem_cap * 0.70) - resident) // max(per_row, 1)
        tb = max(8, min(512, (raw // 8) * 8))
    tb = max(8, _round_up(min(tb, _round_up(B, 8)), 8))
    Bp = _round_up(B, tb)

    # ---- pad & pre-cast operands on the host/wrapper side ----
    feats = _pad_to(features, (B, S, Hp))
    if Bp != B:
        feats = jnp.pad(feats, ((0, Bp - B), (0, 0), (0, 0)))
    feats = feats.astype(feat_stream_dtype)

    wa1 = _pad_to(params["wa1"], (Hp, Hp)).astype(mm_dtype)
    wp1 = _pad_to(params["wp1"], (Hp, Hp)).astype(mm_dtype)
    wp2 = _pad_to(params["wp2"], (Hp, Ep)).astype(mm_dtype)
    bp2 = _pad_to(params["bp2"], (1, Ep)).astype(jnp.float32)

    # Pack the five (1, H) row vectors into a single (8, Hp) f32 tile.
    rows = jnp.zeros((8, Hp), jnp.float32)
    rows = rows.at[0, :H].set(params["ba1"].reshape(-1).astype(jnp.float32))
    rows = rows.at[1, :H].set(params["wa2"].reshape(-1).astype(jnp.float32))
    rows = rows.at[2, :H].set(params["bp1"].reshape(-1).astype(jnp.float32))
    rows = rows.at[3, :H].set(params["lnw"].reshape(-1).astype(jnp.float32))
    rows = rows.at[4, :H].set(params["lnb"].reshape(-1).astype(jnp.float32))

    # True scalars in SMEM: [ba2, prelu_slope].
    scal = jnp.stack(
        [params["ba2"].reshape(()), params["pra"].reshape(())]
    ).astype(jnp.float32)

    grid = (Bp // tb,)
    c2 = lambda b: (0, 0)

    kernel = functools.partial(
        _embedding_extractor_kernel,
        h_real=H,
        # Exact reciprocal on the f32 path (tight reference tolerance);
        # EUP approx reciprocal on the reduced-precision path.
        approx_recip=(weight_bytes < 4),
    )

    in_specs = [
        # Streamed feature block; pass explicit depth only if non-default.
        _maybe_buffered((tb, S, Hp), lambda b: (b, 0, 0),
                        feature_buffers if feature_buffers != 2 else None),
        _maybe_buffered((Hp, Hp), c2, 1),   # wa1 (resident, single-buffered)
        _maybe_buffered((Hp, Hp), c2, 1),   # wp1
        _maybe_buffered((Hp, Ep), c2, 1),   # wp2
        _maybe_buffered((8, Hp), c2, 1),    # packed bias / gamma / beta rows
        _maybe_buffered((1, Ep), c2, 1),    # bp2
        pl.BlockSpec(memory_space=pltpu.MemorySpace.SMEM),  # [ba2, prelu] scalars
    ]

    out = pl.pallas_call(
        kernel,
        out_shape=jax.ShapeDtypeStruct((Bp, Ep), jnp.float32),
        grid_spec=pltpu.PrefetchScalarGridSpec(
            num_scalar_prefetch=0,
            grid=grid,
            in_specs=in_specs,
            out_specs=pl.BlockSpec((tb, Ep), lambda b: (b, 0)),
        ),
        compiler_params=pltpu.CompilerParams(
            dimension_semantics=("parallel",),   # shards batch grid across v7x TCs
            vmem_limit_bytes=vmem_limit,
        ),
    )(feats, wa1, wp1, wp2, rows, bp2, scal)

    return out[:B, :E]


def init_params(key, hidden_size, embed_dim):
    ks = jax.random.split(key, 8)
    scale = 1.0 / jnp.sqrt(hidden_size)
    return {
        # attention_layer
        "wa1": jax.random.uniform(ks[0], (hidden_size, hidden_size), jnp.float32, -scale, scale),
        "ba1": jax.random.uniform(ks[1], (1, hidden_size), jnp.float32, -scale, scale),
        "wa2": jax.random.uniform(ks[2], (1, hidden_size), jnp.float32, -scale, scale),
        "ba2": jax.random.uniform(ks[3], (1, 1), jnp.float32, -scale, scale),
        # projection_layer
        "wp1": jax.random.uniform(ks[4], (hidden_size, hidden_size), jnp.float32, -scale, scale),
        "bp1": jax.random.uniform(ks[5], (1, hidden_size), jnp.float32, -scale, scale),
        "lnw": jnp.ones((1, hidden_size), jnp.float32),     # LayerNorm defaults
        "lnb": jnp.zeros((1, hidden_size), jnp.float32),
        "pra": jnp.full((1, 1), 0.25, jnp.float32),          # PReLU default slope
        "wp2": jax.random.uniform(ks[6], (hidden_size, embed_dim), jnp.float32, -scale, scale),
        "bp2": jax.random.uniform(ks[7], (1, embed_dim), jnp.float32, -scale, scale),
    }


def reference(features, p):
    """Pure-JAX reference matching the PyTorch forward exactly."""
    h = jnp.tanh(features @ p["wa1"] + p["ba1"][0])                     # (B,S,H)
    scores = jnp.sum(h * p["wa2"][0], axis=-1, keepdims=True) + p["ba2"][0, 0]
    attn = jax.nn.softmax(scores, axis=1)                                # (B,S,1)
    pooled = jnp.sum(attn * features, axis=1)                            # (B,H)
    p1 = pooled @ p["wp1"] + p["bp1"][0]
    mu = jnp.mean(p1, axis=-1, keepdims=True)
    var = jnp.mean((p1 - mu) ** 2, axis=-1, keepdims=True)
    ln = (p1 - mu) / jnp.sqrt(var + 1e-5) * p["lnw"][0] + p["lnb"][0]
    pr = jnp.where(ln >= 0, ln, p["pra"][0, 0] * ln)
    return pr @ p["wp2"] + p["bp2"][0]


if __name__ == "__main__":
    key = jax.random.PRNGKey(0)
    k_feat, k_par, k_feat2 = jax.random.split(key, 3)

    # Small shapes consistent with the module: (batch, seq, hidden) -> embed.
    B, S, H, E = 2, 8, 32, 16
    features = jax.random.normal(k_feat, (B, S, H), jnp.float32)
    params = init_params(k_par, H, E)

    out = jax.block_until_ready(embedding_extractor(features, params))
    ref = reference(features, params)
    assert out.shape == (B, E)
    assert jnp.allclose(out, ref, atol=1e-4, rtol=1e-4), "f32 mismatch vs reference"

    # Multi-grid-step path (B > tb, not a multiple of tb) with explicit small tile.
    B2 = 20
    features2 = jax.random.normal(k_feat2, (B2, S, H), jnp.float32)
    out2 = jax.block_until_ready(embedding_extractor(features2, params, tb=8))
    ref2 = reference(features2, params)
    assert out2.shape == (B2, E)
    assert jnp.allclose(out2, ref2, atol=1e-4, rtol=1e-4), "multi-block mismatch"

    # bf16 weights + bf16 feature streaming (v6e/v7x path), f32 accumulation.
    out_bf16 = jax.block_until_ready(
        embedding_extractor(features, params, matmul_dtype=jnp.bfloat16)
    )
    assert out_bf16.shape == (B, E)
    assert jnp.allclose(out_bf16, ref, atol=1e-1, rtol=1e-1), "bf16 variant mismatch"

    print("KERNEL_OK")
</pallas_src>

<mosaic_0001>
module attributes {stable_mosaic.version = 11 : i64} {
  func.func @_embedding_extractor_kernel(%arg0: i32, %arg1: memref<8x8x128xf32, #tpu.memory_space<vmem>>, %arg2: memref<128x128xf32, #tpu.memory_space<vmem>>, %arg3: memref<128x128xf32, #tpu.memory_space<vmem>>, %arg4: memref<128x128xf32, #tpu.memory_space<vmem>>, %arg5: memref<8x128xf32, #tpu.memory_space<vmem>>, %arg6: memref<1x128xf32, #tpu.memory_space<vmem>>, %arg7: memref<2xf32, #tpu.memory_space<smem>>, %arg8: memref<8x128xf32, #tpu.memory_space<vmem>>) attributes {dimension_semantics = [#tpu.dimension_semantics<parallel>], iteration_bounds = array<i64: 1>, scalar_prefetch = 0 : i64, scratch_operands = 0 : i64, tpu.core_type = #tpu.core_type<tc>, window_params = [{transform_indices = @transform_0, window_bounds = array<i64: 8, 8, 128>}, {pipeline_mode = #tpu.pipeline_mode<synchronous>, transform_indices = @transform_1, window_bounds = array<i64: 128, 128>}, {pipeline_mode = #tpu.pipeline_mode<synchronous>, transform_indices = @transform_2, window_bounds = array<i64: 128, 128>}, {pipeline_mode = #tpu.pipeline_mode<synchronous>, transform_indices = @transform_3, window_bounds = array<i64: 128, 128>}, {pipeline_mode = #tpu.pipeline_mode<synchronous>, transform_indices = @transform_4, window_bounds = array<i64: 8, 128>}, {pipeline_mode = #tpu.pipeline_mode<synchronous>, transform_indices = @transform_5, window_bounds = array<i64: 1, 128>}, {transform_indices = @transform_6, window_bounds = array<i64: 2>}, {transform_indices = @transform_7, window_bounds = array<i64: 8, 128>}]} {
    %c0 = arith.constant 0 : index
    %c0_0 = arith.constant 0 : index
    %c0_1 = arith.constant 0 : index
    %0 = vector.load %arg1[%c0, %c0_0, %c0_1] : memref<8x8x128xf32, #tpu.memory_space<vmem>>, vector<8x8x128xf32>
    %1 = vector.shape_cast %0 : vector<8x8x128xf32> to vector<64x128xf32>
    %c0_2 = arith.constant 0 : index
    %c0_3 = arith.constant 0 : index
    %2 = vector.load %arg5[%c0_2, %c0_3] : memref<8x128xf32, #tpu.memory_space<vmem>>, vector<1x128xf32>
    %c1 = arith.constant 1 : index
    %c0_4 = arith.constant 0 : index
    %3 = vector.load %arg5[%c1, %c0_4] : memref<8x128xf32, #tpu.memory_space<vmem>>, vector<1x128xf32>
    %c2 = arith.constant 2 : index
    %c0_5 = arith.constant 0 : index
    %4 = vector.load %arg5[%c2, %c0_5] : memref<8x128xf32, #tpu.memory_space<vmem>>, vector<1x128xf32>
    %c3 = arith.constant 3 : index
    %c0_6 = arith.constant 0 : index
    %5 = vector.load %arg5[%c3, %c0_6] : memref<8x128xf32, #tpu.memory_space<vmem>>, vector<1x128xf32>
    %c4 = arith.constant 4 : index
    %c0_7 = arith.constant 0 : index
    %6 = vector.load %arg5[%c4, %c0_7] : memref<8x128xf32, #tpu.memory_space<vmem>>, vector<1x128xf32>
    %c0_8 = arith.constant 0 : index
    %c0_9 = arith.constant 0 : index
    %7 = vector.load %arg2[%c0_8, %c0_9] : memref<128x128xf32, #tpu.memory_space<vmem>>, vector<128x128xf32>
    %cst = arith.constant dense<0.000000e+00> : vector<64x128xf32>
    %8 = tpu.matmul %1, %7, %cst {dimension_numbers = #tpu.dot_dimension_numbers<[1], [0], [0], [1], [0, 0, 1, 1], [], []>} : vector<64x128xf32>, vector<128x128xf32>, vector<64x128xf32> -> vector<64x128xf32>
    %9 = vector.broadcast %2 : vector<1x128xf32> to vector<64x128xf32>
    %10 = arith.addf %8, %9 : vector<64x128xf32>
    %11 = math.tanh %10 : vector<64x128xf32>
    %12 = vector.shape_cast %11 : vector<64x128xf32> to vector<8x8x128xf32>
    %13 = vector.shape_cast %3 : vector<1x128xf32> to vector<1x1x128xf32>
    %14 = vector.broadcast %13 : vector<1x1x128xf32> to vector<8x8x128xf32>
    %15 = arith.mulf %12, %14 : vector<8x8x128xf32>
    %cst_10 = arith.constant dense<0.000000e+00> : vector<8x8xf32>
    %16 = vector.multi_reduction <add>, %15, %cst_10 [2] : vector<8x8x128xf32> to vector<8x8xf32>
    %c0_11 = arith.constant 0 : index
    %17 = memref.load %arg7[%c0_11] : memref<2xf32, #tpu.memory_space<smem>>
    %18 = vector.broadcast %17 : f32 to vector<8x8xf32>
    %19 = arith.addf %16, %18 : vector<8x8xf32>
    %cst_12 = arith.constant dense<0xFF800000> : vector<8xf32>
    %20 = vector.multi_reduction <maximumf>, %19, %cst_12 [1] : vector<8x8xf32> to vector<8xf32>
    %21 = vector.shape_cast %20 : vector<8xf32> to vector<8x1xf32>
    %22 = vector.broadcast %21 : vector<8x1xf32> to vector<8x8xf32>
    %23 = arith.subf %19, %22 : vector<8x8xf32>
    %24 = math.exp %23 : vector<8x8xf32>
    %cst_13 = arith.constant dense<0.000000e+00> : vector<8xf32>
    %25 = vector.multi_reduction <add>, %24, %cst_13 [1] : vector<8x8xf32> to vector<8xf32>
    %26 = vector.shape_cast %25 : vector<8xf32> to vector<8x1xf32>
    %27 = tpu.reciprocal %26 : vector<8x1xf32> -> vector<8x1xf32>
    %28 = vector.broadcast %27 : vector<8x1xf32> to vector<8x8xf32>
    %29 = arith.mulf %24, %28 : vector<8x8xf32>
    %30 = vector.shape_cast %29 : vector<8x8xf32> to vector<8x8x1xf32>
    %31 = vector.broadcast %30 : vector<8x8x1xf32> to vector<8x8x128xf32>
    %32 = arith.mulf %31, %0 : vector<8x8x128xf32>
    %cst_14 = arith.constant dense<0.000000e+00> : vector<8x128xf32>
    %33 = vector.multi_reduction <add>, %32, %cst_14 [1] : vector<8x8x128xf32> to vector<8x128xf32>
    %c0_15 = arith.constant 0 : index
    %c0_16 = arith.constant 0 : index
    %34 = vector.load %arg3[%c0_15, %c0_16] : memref<128x128xf32, #tpu.memory_space<vmem>>, vector<128x128xf32>
    %cst_17 = arith.constant dense<0.000000e+00> : vector<8x128xf32>
    %35 = tpu.matmul %33, %34, %cst_17 {dimension_numbers = #tpu.dot_dimension_numbers<[1], [0], [0], [1], [0, 0, 1, 1], [], []>} : vector<8x128xf32>, vector<128x128xf32>, vector<8x128xf32> -> vector<8x128xf32>
    %36 = vector.broadcast %4 : vector<1x128xf32> to vector<8x128xf32>
    %37 = arith.addf %35, %36 : vector<8x128xf32>
    %cst_18 = arith.constant dense<0.000000e+00> : vector<8xf32>
    %38 = vector.multi_reduction <add>, %37, %cst_18 [1] : vector<8x128xf32> to vector<8xf32>
    %39 = vector.shape_cast %38 : vector<8xf32> to vector<8x1xf32>
    %cst_19 = arith.constant 3.125000e-02 : f32
    %40 = vector.broadcast %cst_19 : f32 to vector<8x1xf32>
    %41 = arith.mulf %39, %40 : vector<8x1xf32>
    %42 = tpu.iota {dimensions = array<i32: 1>} : vector<1x128xi32>
    %c32_i32 = arith.constant 32 : i32
    %43 = vector.broadcast %c32_i32 : i32 to vector<1x128xi32>
    %44 = arith.cmpi slt, %42, %43 : vector<1x128xi32>
    %45 = vector.broadcast %41 : vector<8x1xf32> to vector<8x128xf32>
    %46 = arith.subf %37, %45 : vector<8x128xf32>
    %cst_20 = arith.constant 0.000000e+00 : f32
    %47 = vector.shape_cast %44 : vector<1x128xi1> to vector<1x128xi1>
    %48 = vector.broadcast %47 : vector<1x128xi1> to vector<8x128xi1>
    %49 = vector.broadcast %cst_20 : f32 to vector<8x128xf32>
    %50 = arith.select %48, %46, %49 : vector<8x128xi1>, vector<8x128xf32>
    %51 = arith.mulf %50, %50 : vector<8x128xf32>
    %cst_21 = arith.constant dense<0.000000e+00> : vector<8xf32>
    %52 = vector.multi_reduction <add>, %51, %cst_21 [1] : vector<8x128xf32> to vector<8xf32>
    %53 = vector.shape_cast %52 : vector<8xf32> to vector<8x1xf32>
    %cst_22 = arith.constant 3.125000e-02 : f32
    %54 = vector.broadcast %cst_22 : f32 to vector<8x1xf32>
    %55 = arith.mulf %53, %54 : vector<8x1xf32>
    %cst_23 = arith.constant 9.99999974E-6 : f32
    %56 = vector.broadcast %cst_23 : f32 to vector<8x1xf32>
    %57 = arith.addf %55, %56 : vector<8x1xf32>
    %58 = math.rsqrt %57 : vector<8x1xf32>
    %59 = vector.broadcast %58 : vector<8x1xf32> to vector<8x128xf32>
    %60 = arith.mulf %50, %59 : vector<8x128xf32>
    %61 = vector.broadcast %5 : vector<1x128xf32> to vector<8x128xf32>
    %62 = arith.mulf %60, %61 : vector<8x128xf32>
    %63 = vector.broadcast %6 : vector<1x128xf32> to vector<8x128xf32>
    %64 = arith.addf %62, %63 : vector<8x128xf32>
    %c1_24 = arith.constant 1 : index
    %65 = memref.load %arg7[%c1_24] : memref<2xf32, #tpu.memory_space<smem>>
    %cst_25 = arith.constant 0.000000e+00 : f32
    %66 = vector.broadcast %cst_25 : f32 to vector<8x128xf32>
    %67 = arith.cmpf oge, %64, %66 : vector<8x128xf32>
    %68 = vector.broadcast %65 : f32 to vector<8x128xf32>
    %69 = arith.mulf %68, %64 : vector<8x128xf32>
    %70 = arith.select %67, %64, %69 : vector<8x128xi1>, vector<8x128xf32>
    %c0_26 = arith.constant 0 : index
    %c0_27 = arith.constant 0 : index
    %71 = vector.load %arg4[%c0_26, %c0_27] : memref<128x128xf32, #tpu.memory_space<vmem>>, vector<128x128xf32>
    %cst_28 = arith.constant dense<0.000000e+00> : vector<8x128xf32>
    %72 = tpu.matmul %70, %71, %cst_28 {dimension_numbers = #tpu.dot_dimension_numbers<[1], [0], [0], [1], [0, 0, 1, 1], [], []>} : vector<8x128xf32>, vector<128x128xf32>, vector<8x128xf32> -> vector<8x128xf32>
    %c0_29 = arith.constant 0 : index
    %c0_30 = arith.constant 0 : index
    %73 = vector.load %arg6[%c0_29, %c0_30] : memref<1x128xf32, #tpu.memory_space<vmem>>, vector<1x128xf32>
    %74 = vector.broadcast %73 : vector<1x128xf32> to vector<8x128xf32>
    %75 = arith.addf %72, %74 : vector<8x128xf32>
    %c0_31 = arith.constant 0 : index
    %c0_32 = arith.constant 0 : index
    %76 = vector.load %arg8[%c0_31, %c0_32] : memref<8x128xf32, #tpu.memory_space<vmem>>, vector<8x128xf32>
    tpu.vector_store %arg8[%c0_31, %c0_32], %75 {strides = array<i32>} : memref<8x128xf32, #tpu.memory_space<vmem>>, vector<8x128xf32>,
    return
  }
  func.func @transform_0(%arg0: i32) -> (i32, i32, i32) {
    %c0_i32 = arith.constant 0 : i32
    %c0_i32_0 = arith.constant 0 : i32
    %c0_i32_1 = arith.constant 0 : i32
    return %arg0, %c0_i32, %c0_i32_0 : i32, i32, i32
  }
  func.func @transform_1(%arg0: i32) -> (i32, i32) {
    %c0_i32 = arith.constant 0 : i32
    %c0_i32_0 = arith.constant 0 : i32
    %c0_i32_1 = arith.constant 0 : i32
    return %c0_i32, %c0_i32_0 : i32, i32
  }
  func.func @transform_2(%arg0: i32) -> (i32, i32) {
    %c0_i32 = arith.constant 0 : i32
    %c0_i32_0 = arith.constant 0 : i32
    %c0_i32_1 = arith.constant 0 : i32
    return %c0_i32, %c0_i32_0 : i32, i32
  }
  func.func @transform_3(%arg0: i32) -> (i32, i32) {
    %c0_i32 = arith.constant 0 : i32
    %c0_i32_0 = arith.constant 0 : i32
    %c0_i32_1 = arith.constant 0 : i32
    return %c0_i32, %c0_i32_0 : i32, i32
  }
  func.func @transform_4(%arg0: i32) -> (i32, i32) {
    %c0_i32 = arith.constant 0 : i32
    %c0_i32_0 = arith.constant 0 : i32
    %c0_i32_1 = arith.constant 0 : i32
    return %c0_i32, %c0_i32_0 : i32, i32
  }
  func.func @transform_5(%arg0: i32) -> (i32, i32) {
    %c0_i32 = arith.constant 0 : i32
    %c0_i32_0 = arith.constant 0 : i32
    %c0_i32_1 = arith.constant 0 : i32
    return %c0_i32, %c0_i32_0 : i32, i32
  }
  func.func @transform_6(%arg0: i32) -> i32 {
    %c0_i32 = arith.constant 0 : i32
    %c0_i32_0 = arith.constant 0 : i32
    return %c0_i32 : i32
  }
  func.func @transform_7(%arg0: i32) -> (i32, i32) {
    %c0_i32 = arith.constant 0 : i32
    %c0_i32_0 = arith.constant 0 : i32
    return %arg0, %c0_i32 : i32, i32
  }
}

</mosaic_0001>

<bundles_post_ra>
// kernel: tpu_custom_call.1
= control target key start
LH: loop header
LB: loop body
LE: loop exit
PB: predicated region body
PF: predicated region fallthrough
CT: control target
= control target key end

     0   :  { %12 = vsyncpa [#allocation3], 0  ;;  %s1510_s0 = inlined_call_operand.hbm [shape: f32[8,8,128], index: 0, kind: input, shape index: {}]   ;;  %s1511_s1 = inlined_call_operand.hbm [shape: f32[128,128], index: 1, kind: input, shape index: {}]   ;;  %s1512_s2 = inlined_call_operand.hbm [shape: f32[128,128], index: 2, kind: input, shape index: {}]   ;;  %s1513_s3 = inlined_call_operand.hbm [shape: f32[128,128], index: 3, kind: input, shape index: {}]   ;;  %s1514_s4 = inlined_call_operand.hbm [shape: f32[8,128], index: 4, kind: input, shape index: {}]   ;;  %s1515_s5 = inlined_call_operand.vmem [shape: f32[1,128], index: 5, kind: input, shape index: {}]   ;;  %s1516_s6 = inlined_call_operand.vmem [shape: f32[2], index: 6, kind: input, shape index: {}]   ;;  %s1517_s7 = inlined_call_operand.hbm [shape: f32[8,128], index: 7, kind: output, shape index: {}]  }
   0x1   :  { %13 = vsyncpa [#allocation7], 0 }
   0x2   :  { %14 = vsyncpa [#allocation10], 0 }
   0x3   :  { %15 = vsyncpa [#allocation5], 0 }
   0x4   :  { %16 = vsyncpa [#allocation4], 0  ;;  %s1256_s24 = smov [#allocation6]   ;;  %s1257_s26 = smov [#allocation9]  }
   0x5   :  { %s34_s25 = sshll.u32 %s1256_s24, 4  ;;  %s58_s27 = sshll.u32 %s1257_s26, 4  ;;  %s35_s25 = int_to_ptr.vmem [resolvable:$true] %s34_s25  ;;  %s59_s27 = int_to_ptr.vmem [resolvable:$true] %s58_s27 }
   0x6   :  { %s1122_s28 = scalar_lea.vmem %s35_s25, 2048  ;;  %p1127_p1 = scmp.lt.s32.totalorder %s35_s25, %s35_s25 }
   0x7   :  { %p1123_p0 = scmp.ne.s32.totalorder %s35_s25, %s1122_s28  ;;  %p1128_p2 = scmp.lt.s32.totalorder %s1122_s28, %s1122_s28 }
   0x9   :  { %p1129_p3 = por %p1128_p2, %p1127_p1 }
   0xb   :  { %p1130_p4 = pnand %p1129_p3, %p1123_p0 }
   0xd   :  { %1133 = shalt.err (!%p1130_p4)
}
   0xe   :  { %s1258_s29 = smov 128   ;;  %s1259_s30 = smov 8  }
   0xf   :  { %40 = dma.hbm_to_vmem [thread:$0]  %s1511_s1, 2048, %s35_s25, [#allocation7], %s1258_s29, %s1258_s29, %s1259_s30  }
  0x10   :  { %s1142_s10 = scalar_lea.vmem %s59_s27, 2048  ;;  %p1147_p6 = scmp.lt.s32.totalorder %s59_s27, %s59_s27 }
  0x11   :  { %p1143_p5 = scmp.ne.s32.totalorder %s59_s27, %s1142_s10  ;;  %p1148_p7 = scmp.lt.s32.totalorder %s1142_s10, %s1142_s10 }
  0x13   :  { %p1149_p8 = por %p1148_p7, %p1147_p6 }
  0x15   :  { %p1150_p9 = pnand %p1149_p8, %p1143_p5 }
  0x17   :  { %1153 = shalt.err (!%p1150_p9)
}
  0x18   :  { %64 = dma.hbm_to_vmem [thread:$0]  %s1513_s3, 2048, %s59_s27, [#allocation10], %s1258_s29, %s1258_s29, %s1259_s30  }
  0x19   :  { %s1260_s13 = smov [#allocation2]   ;;  %s1261_s15 = smov [#allocation8]  }
  0x1a   :  { %s22_s14 = sshll.u32 %s1260_s13, 4  ;;  %s46_s16 = sshll.u32 %s1261_s15, 4  ;;  %s23_s14 = int_to_ptr.vmem [resolvable:$true] %s22_s14  ;;  %s47_s16 = int_to_ptr.vmem [resolvable:$true] %s46_s16 }
  0x1b   :  { %s1162_s1 = scalar_lea.vmem %s23_s14, 1024  ;;  %p1167_p11 = scmp.lt.s32.totalorder %s23_s14, %s23_s14 }
  0x1c   :  { %p1163_p10 = scmp.ne.s32.totalorder %s23_s14, %s1162_s1  ;;  %p1168_p12 = scmp.lt.s32.totalorder %s1162_s1, %s1162_s1 }
  0x1e   :  { %p1169_p13 = por %p1168_p12, %p1167_p11 }
  0x20   :  { %p1170_p0 = pnand %p1169_p13, %p1163_p10 }
  0x22   :  { %1173 = shalt.err (!%p1170_p0)
}
  0x23   :  { %28 = dma.hbm_to_vmem [thread:$0]  %s1510_s0, 1024, %s23_s14, [#allocation3], %s1258_s29, %s1258_s29, %s1259_s30  }
  0x24   :  { %s1182_s3 = scalar_lea.vmem %s47_s16, 2048  ;;  %p1187_p2 = scmp.lt.s32.totalorder %s47_s16, %s47_s16 }
  0x25   :  { %p1183_p1 = scmp.ne.s32.totalorder %s47_s16, %s1182_s3  ;;  %p1188_p3 = scmp.lt.s32.totalorder %s1182_s3, %s1182_s3 }
  0x27   :  { %p1189_p4 = por %p1188_p3, %p1187_p2 }
  0x29   :  { %p1190_p5 = pnand %p1189_p4, %p1183_p1 }
  0x2b   :  { %1193 = shalt.err (!%p1190_p5)
}
  0x2c   :  { %52 = dma.hbm_to_vmem [thread:$0]  %s1512_s2, 2048, %s47_s16, [#allocation7], %s1258_s29, %s1258_s29, %s1259_s30  }
  0x2d   :  { %s83_s23 = sshll.u32 %s1516_s6, 4  ;;  %s1262_s24 = smov [#allocation11]   ;;  %s84_s23 = int_to_ptr.vmem [resolvable:$true] %s83_s23 }
  0x2e   :  { %s71_s0 = sshll.u32 %s1262_s24, 4  ;;  %s72_s0 = int_to_ptr.vmem [resolvable:$true] %s71_s0 }
  0x2f   :  { %s1202_s25 = scalar_lea.vmem %s72_s0, 128  ;;  %p1207_p7 = scmp.lt.s32.totalorder %s72_s0, %s72_s0 }
  0x30   :  { %p1203_p6 = scmp.ne.s32.totalorder %s72_s0, %s1202_s25  ;;  %p1208_p8 = scmp.lt.s32.totalorder %s1202_s25, %s1202_s25 }
  0x32   :  { %p1209_p9 = por %p1208_p8, %p1207_p7 }
  0x34   :  { %p1210_p10 = pnand %p1209_p9, %p1203_p6 }
  0x36   :  { %1213 = shalt.err (!%p1210_p10)
}
  0x37   :  { %74 = dma.hbm_to_vmem [thread:$0]  %s1514_s4, 128, %s72_s0, [#allocation10]  }
  0x38   :  { %s1214_s2 = scalar_lea.vmem %s84_s23, 16  ;;  %p1219_p12 = scmp.lt.s32.totalorder %s84_s23, %s84_s23 }
  0x39   :  { %p1215_p11 = scmp.ne.s32.totalorder %s84_s23, %s1214_s2  ;;  %p1220_p13 = scmp.lt.s32.totalorder %s1214_s2, %s1214_s2 }
  0x3b   :  { %p1221_p0 = por %p1220_p13, %p1219_p12 }
  0x3d   :  { %p1222_p1 = pnand %p1221_p0, %p1215_p11 }
  0x3f   :  { %1225 = shalt.err (!%p1222_p1)
}
  0x40   :  { %s1263_s6 = smov [#allocation12]  }
  0x41   :  { %86 = dma.vmem_to_smem %s84_s23, 16, %s1263_s6, [#allocation5]  }
  0x42   :  { %1246 = dma.done.wait [#allocation3], 1024  }
  0x43   :  { %1247 = vsyncadd [#allocation3], 4294966272 }
  0x44   :  { %1248 = dma.done.wait [#allocation7], 4096  }
  0x45   :  { %1249 = vsyncadd [#allocation7], 4294963200 }
  0x46   :  { %1250 = dma.done.wait [#allocation10], 2176  }
  0x47   :  { %1251 = vsyncadd [#allocation10], 4294965120 }
  0x48   :  { %1252 = dma.done.wait [#allocation5], 16  }
  0x49   :  { %1253 = vsyncadd [#allocation5], 4294967280 }
  0x4a   :  { %105 = sfence }
  0x4b   :  { %v134_v0 = vld [vmem:[#allocation6 + $0x78] sm:$0xff]  ;;  %v133_v1 = vld [vmem:[#allocation6 + $0x70] sm:$0xff]  ;;  %v132_v2 = vld [vmem:[#allocation6 + $0x68] sm:$0xff]  ;;  %s280_s4 = sld [smem:[#allocation12]]  ;;  %v298_v58 = vlaneseq  ;;  %vm332_vm0 = vcmask 1041409   ;;  %vm334_vm1 = vcmask 1042434  }
  0x4c   :  { %950 = vmatprep.subr.mxu0 %v134_v0  ;;  %v131_v3 = vld [vmem:[#allocation6 + $0x60] sm:$0xff]  ;;  %v130_v5 = vld [vmem:[#allocation6 + $0x58] sm:$0xff]  ;;  %v129_v6 = vld [vmem:[#allocation6 + $0x50] sm:$0xff]  ;;  %vm336_vm2 = vcmask 1043459   ;;  %vm338_vm3 = vcmask 1044484   ;;  %vm340_vm4 = vcmask 1045509  }
  0x4d   :  { %951 = vmatpush3.msra.mxu0 %v134_v0  ;;  %v1338_v4 = vld [vmem:[#allocation2] sm:$0xff]  ;;  %v128_v7 = vld [vmem:[#allocation6 + $0x48] sm:$0xff]  ;;  %v126_v9 = vld [vmem:[#allocation6 + $0x38] sm:$0xff]  ;;  %v1362_v60 = vand.u32 127, %v298_v58  ;;  %v1364_v61 = vshrl.u32 %v298_v58, 7  ;;  %vm342_vm5 = vcmask 1046534  }
  0x4e   :  { %952 = vmatprep.subr.mxu0 %v133_v1  ;;  %982 = vmatprep.mubr.f32.mxu0 %v1338_v4  ;;  %v127_v8 = vld [vmem:[#allocation6 + $0x40] sm:$0xff]  ;;  %v125_v10 = vld [vmem:[#allocation6 + $0x30] sm:$0xff]  ;;  %v124_v11 = vld [vmem:[#allocation6 + $0x28] sm:$0xff]  ;;  %vm344_vm6 = vcmask 1047559   ;;  %vm347_vm7 = vcmask 64512   ;;  %vm1266_vm8 = vmmov 0  }
  0x4f   :  { %953 = vmatpush3.msra.mxu0 %v133_v1  ;;  %v123_v12 = vld [vmem:[#allocation6 + $0x20] sm:$0xff]  ;;  %v122_v13 = vld [vmem:[#allocation6 + $0x18] sm:$0xff]  ;;  %v121_v14 = vld [vmem:[#allocation6 + $0x10] sm:$0xff]  ;;  %vm746_vm9 = vcmp.lt.s32.totalorder %v1362_v60, 32  ;;  %s890_s28 = sld [smem:[#allocation12 + $0x1]]  ;;  %s1267_s8 = smov [#allocation13]  }
  0x50   :  { %954 = vmatprep.subr.mxu0 %v132_v2  ;;  %v120_v15 = vld [vmem:[#allocation6 + $0x8] sm:$0xff]  ;;  %v119_v16 = vld [vmem:[#allocation6] sm:$0xff]  ;;  %v1343_v18 = vld [vmem:[#allocation2 + $0x10] sm:$0xff]  ;;  %s873_s9 = sshll.u32 %s1267_s8, 4  ;;  %s874_s9 = int_to_ptr.vmem [resolvable:$true] %s873_s9 }
  0x51   :  { %955 = vmatpush3.msra.mxu0 %v132_v2  ;;  %v1341_v17 = vld [vmem:[#allocation2 + $0x8] sm:$0xff]  ;;  %v1347_v19 = vld [vmem:[#allocation2 + $0x18] sm:$0xff]  ;;  %v1349_v20 = vld [vmem:[#allocation2 + $0x20] sm:$0xff]  ;;  %v281_v62 = vstv %s280_s4  ;;  %v1368_v2 = vsub.s32 %v1362_v60, %v1364_v61  ;;  %s1226_s10 = scalar_lea.vmem %s874_s9, 128  ;;  %p1231_p3 = scmp.lt.s32.totalorder %s874_s9, %s874_s9 }
  0x52   :  { %956 = vmatprep.subr.mxu0 %v131_v3  ;;  %v1353_v21 = vld [vmem:[#allocation2 + $0x28] sm:$0xff]  ;;  %v1355_v22 = vld [vmem:[#allocation2 + $0x30] sm:$0xff]  ;;  %v1359_v23 = vld [vmem:[#allocation2 + $0x38] sm:$0xff]  ;;  %p1227_p2 = scmp.ne.s32.totalorder %s874_s9, %s1226_s10  ;;  %p1232_p4 = scmp.lt.s32.totalorder %s1226_s10, %s1226_s10 }
  0x53   :  { %957 = vmatpush3.msra.mxu0 %v131_v3  ;;  %v885_v24 = vld [vmem:[#allocation11] ss:$0 sm:$0xff]  ;;  %v886_v40 = vld [vmem:[#allocation11 + $0x1] ss:$0 sm:$0xff] }
  0x54   :  { %958 = vmatprep.subr.mxu0 %v130_v5  ;;  %v781_v60 = vld [vmem:[#allocation9 + $0x40] sm:$0xff]  ;;  %p1233_p5 = por %p1232_p4, %p1231_p3 }
  0x55   :  { %959 = vmatpush3.msra.mxu0 %v130_v5 }
  0x56   :  { %960 = vmatprep.subr.mxu0 %v129_v6  ;;  %p1234_p6 = pnand %p1233_p5, %p1227_p2 }
  0x57   :  { %961 = vmatpush3.msra.mxu0 %v129_v6 }
  0x58   :  { %962 = vmatprep.subr.mxu0 %v128_v7 }
  0x59   :  { %963 = vmatpush3.msra.mxu0 %v128_v7 }
  0x5a   :  { %964 = vmatprep.subr.mxu0 %v127_v8 }
  0x5b   :  { %965 = vmatpush3.msra.mxu0 %v127_v8 }
  0x5c   :  { %966 = vmatprep.subr.mxu0 %v126_v9 }
  0x5d   :  { %967 = vmatpush3.msra.mxu0 %v126_v9 }
  0x5e   :  { %968 = vmatprep.subr.mxu0 %v125_v10 }
  0x5f   :  { %969 = vmatpush3.msra.mxu0 %v125_v10 }
  0x60   :  { %970 = vmatprep.subr.mxu0 %v124_v11 }
  0x61   :  { %971 = vmatpush3.msra.mxu0 %v124_v11 }
  0x62   :  { %972 = vmatprep.subr.mxu0 %v123_v12 }
  0x63   :  { %973 = vmatpush3.msra.mxu0 %v123_v12 }
  0x64   :  { %974 = vmatprep.subr.mxu0 %v122_v13 }
  0x65   :  { %975 = vmatpush3.msra.mxu0 %v122_v13 }
  0x66   :  { %976 = vmatprep.subr.mxu0 %v121_v14 }
  0x67   :  { %977 = vmatpush3.msra.mxu0 %v121_v14 }
  0x68   :  { %978 = vmatprep.subr.mxu0 %v120_v15 }
  0x69   :  { %979 = vmatpush3.msra.mxu0 %v120_v15 }
  0x6a   :  { %980 = vmatprep.subr.mxu0 %v119_v16 }
  0x6b   :  { %981 = vmatpush3.msra.mxu0 %v119_v16 }
  0x6c   :  { %983 = vmatmul.mubr.f32.vlgmr.msra.gmra.mxu0 %v1341_v17 }
  0x6d   :  { %985 = vmatprep.mubr.f32.mxu0 %v1343_v18 }
  0x70   :  { %986 = vmatmul.mubr.f32.gmra.mxu0 %v1347_v19 }
  0x71   :  { %988 = vmatprep.mubr.f32.mxu0 %v1349_v20 }
  0x74   :  { %989 = vmatmul.mubr.f32.gmra.mxu0 %v1353_v21 }
  0x75   :  { %991 = vmatprep.mubr.f32.mxu0 %v1355_v22 }
  0x78   :  { %992 = vmatmul.mubr.f32.gmra.mxu0 %v1359_v23 }
 0x12c   :  { %v984_v25 = vpop.f32.mrf.mxu0 }
 0x12d   :  { %v211_v26 = vadd.f32 %v984_v25, %v885_v24 }
 0x12e   :  { %v205_v27 = vpop.f32.mrf.mxu0 }
 0x12f   :  { %1078 = vtanh.f32 %v211_v26  ;;  %v206_v28 = vadd.f32 %v885_v24, %v205_v27 }
 0x130   :  { %v987_v29 = vpop.f32.mrf.mxu0 }
 0x131   :  { %1080 = vtanh.f32 %v206_v28  ;;  %v221_v30 = vadd.f32 %v987_v29, %v885_v24 }
 0x132   :  { %v215_v31 = vpop.f32.mrf.mxu0 }
 0x133   :  { %1082 = vtanh.f32 %v221_v30  ;;  %v216_v32 = vadd.f32 %v885_v24, %v215_v31 }
 0x134   :  { %v990_v33 = vpop.f32.mrf.mxu0 }
 0x135   :  { %1084 = vtanh.f32 %v216_v32  ;;  %v231_v34 = vadd.f32 %v990_v33, %v885_v24 }
 0x136   :  { %v225_v35 = vpop.f32.mrf.mxu0 }
 0x137   :  { %v226_v36 = vadd.f32 %v885_v24, %v225_v35  ;;  %1086 = vtanh.f32 %v231_v34 }
 0x138   :  { %v993_v37 = vpop.f32.mrf.mxu0 }
 0x139   :  { %1088 = vtanh.f32 %v226_v36  ;;  %v241_v38 = vadd.f32 %v993_v37, %v885_v24 }
 0x13a   :  { %v235_v39 = vpop.f32.mrf.mxu0 }
 0x13b   :  { %v236_v41 = vadd.f32 %v885_v24, %v235_v39  ;;  %1090 = vtanh.f32 %v241_v38  ;;  %v1264_v39 = vmov 0  }
 0x13c   :  { %v1079_v42 = vpop.eup %1078  ;;  %1077 = vset.pattern.permute.xlu0 %v1264_v39  ;;  %1076 = vset.pattern.permute.xlu1 %v1264_v39 }
 0x13d   :  { %1092 = vtanh.f32 %v236_v41  ;;  %v257_v43 = vmul.f32 %v1079_v42, %v886_v40  ;;  %v358_v41 = vsub.s32 1, %v1364_v61  ;;  %v362_v42 = vsub.s32 2, %v1364_v61 }
 0x13e   :  { %v1081_v44 = vpop.eup %1080 }
 0x13f   :  { %266 = vadd.xlane.f32.xlu0 %v257_v43  ;;  %v256_v47 = vmul.f32 %v1081_v44, %v886_v40  ;;  %v366_v43 = vsub.s32 3, %v1364_v61 }
 0x140   :  { %v1083_v45 = vpop.eup %1082 }
 0x141   :  { %v259_v46 = vmul.f32 %v1083_v45, %v886_v40 }
 0x142   :  { %v1085_v48 = vpop.eup %1084 }
 0x143   :  { %270 = vadd.xlane.f32.xlu1 %v259_v46  ;;  %264 = vadd.xlane.f32.xlu0 %v256_v47  ;;  %v258_v50 = vmul.f32 %v1085_v48, %v886_v40  ;;  %v370_v48 = vsub.s32 4, %v1364_v61 }
 0x144   :  { %v1087_v49 = vpop.eup %1086 }
 0x145   :  { %v261_v54 = vmul.f32 %v1087_v49, %v886_v40 }
 0x146   :  { %v1089_v51 = vpop.eup %1088 }
 0x147   :  { %268 = vadd.xlane.f32.xlu1 %v258_v50  ;;  %v260_v52 = vmul.f32 %v1089_v51, %v886_v40 }
 0x148   :  { %v1091_v53 = vpop.eup %1090 }
 0x149   :  { %272 = vadd.xlane.f32.xlu0 %v260_v52  ;;  %v263_v57 = vmul.f32 %v1091_v53, %v886_v40 }
 0x14a   :  { %v1093_v55 = vpop.eup %1092 }
 0x14b   :  { %274 = vadd.xlane.f32.xlu1 %v261_v54  ;;  %v262_v56 = vmul.f32 %v1093_v55, %v886_v40  ;;  %v354_v40 = vsub.s32 0, %v1364_v61  ;;  %v374_v55 = vsub.s32 5, %v1364_v61 }
 0x14d   :  { %276 = vadd.xlane.f32.xlu0 %v262_v56 }
 0x14f   :  { %278 = vadd.xlane.f32.xlu1 %v263_v57 }
 0x1c8   :  { %v267_v59 = vpop.xlane.xlu0 %266 }
 0x1c9   :  { %v283_v3 = vadd.f32 %v281_v62, %v267_v59  ;;  %v378_v59 = vsub.s32 6, %v1364_v61 }
 0x1cb   :  { %v307_v9 = vrot.slane %v283_v3, %v1368_v2 }
 0x1cc   :  { %v271_v63 = vpop.xlane.xlu1 %270  ;;  %v265_v0 = vpop.xlane.xlu0 %264 }
 0x1cd   :  { %v282_v1 = vadd.f32 %v281_v62, %v265_v0  ;;  %v1370_v5 = vadd.f32 %v281_v62, %v271_v63 }
 0x1cf   :  { %v303_v6 = vrot.slane %v282_v1, %v1368_v2  ;;  %v315_v13 = vrot.slane %v1370_v5, %v1368_v2 }
 0x1d0   :  { %v269_v7 = vpop.xlane.xlu1 %268 }
 0x1d1   :  { %v284_v8 = vadd.f32 %v281_v62, %v269_v7  ;;  %v333_v14 = vsel %vm332_vm0, %v307_v9, %v303_v6 }
 0x1d2   :  { %v273_v10 = vpop.xlane.xlu0 %272 }
 0x1d3   :  { %v311_v11 = vrot.slane %v284_v8, %v1368_v2  ;;  %v286_v12 = vadd.f32 %v281_v62, %v273_v10 }
 0x1d4   :  { %v275_v15 = vpop.xlane.xlu1 %274 }
 0x1d5   :  { %v335_v16 = vsel %vm334_vm1, %v311_v11, %v333_v14  ;;  %v319_v24 = vrot.slane %v286_v12, %v1368_v2  ;;  %v287_v25 = vadd.f32 %v281_v62, %v275_v15 }
 0x1d6   :  { %v337_v26 = vsel %vm336_vm2, %v315_v13, %v335_v16  ;;  %v277_v27 = vpop.xlane.xlu0 %276 }
 0x1d7   :  { %v339_v28 = vsel %vm338_vm3, %v319_v24, %v337_v26  ;;  %v323_v29 = vrot.slane %v287_v25, %v1368_v2  ;;  %v288_v30 = vadd.f32 %v281_v62, %v277_v27 }
 0x1d8   :  { %v279_v31 = vpop.xlane.xlu1 %278 }
 0x1d9   :  { %v327_v32 = vrot.slane %v288_v30, %v1368_v2  ;;  %v289_v33 = vadd.f32 %v281_v62, %v279_v31  ;;  %v341_v34 = vsel %vm340_vm4, %v323_v29, %v339_v28 }
 0x1db   :  { %v331_v35 = vrot.slane %v289_v33, %v1368_v2  ;;  %v343_v36 = vsel %vm342_vm5, %v327_v32, %v341_v34 }
 0x1dd   :  { %v345_v37 = vsel %vm344_vm6, %v331_v35, %v343_v36 }
 0x1de   :  { %v348_v38 = vsel %vm347_vm7, %v345_v37, -inf }
 0x1df   :  { %349 = vmax.xlane.f32.xlu0 %v348_v38 }
 0x268   :  { %v350_v44 = vpop.xlane.xlu0 %349 }
 0x269   :  { %v355_v45 = vrot.slane %v350_v44, %v354_v40  ;;  %v359_v46 = vrot.slane %v350_v44, %v358_v41  ;;  %v363_v47 = vrot.slane %v350_v44, %v362_v42  ;;  %v367_v49 = vrot.slane %v350_v44, %v366_v43 }
 0x26a   :  { %v371_v56 = vrot.slane %v350_v44, %v370_v48  ;;  %v375_v62 = vrot.slane %v350_v44, %v374_v55 }
 0x26b   :  { %v392_v50 = vsub.f32 %v282_v1, %v355_v45  ;;  %v393_v51 = vsub.f32 %v283_v3, %v359_v46  ;;  %v394_v52 = vsub.f32 %v284_v8, %v363_v47  ;;  %v395_v57 = vsub.f32 %v1370_v5, %v367_v49 }
 0x26c   :  { %v396_v63 = vsub.f32 %v286_v12, %v371_v56  ;;  %v382_v1 = vsub.s32 7, %v1364_v61  ;;  %v379_v3 = vrot.slane %v350_v44, %v378_v59  ;;  %v397_v6 = vsub.f32 %v287_v25, %v375_v62  ;;  %v645_v61 = vld [vmem:[#allocation8 + $0x40] sm:$0xff] }
 0x26d   :  { %v400_v53 = vmul.f32 1.442695, %v392_v50  ;;  %v402_v54 = vmul.f32 1.442695, %v393_v51  ;;  %v404_v58 = vmul.f32 1.442695, %v394_v52 }
 0x26e   :  { %v406_v0 = vmul.f32 1.442695, %v395_v57  ;;  %v408_v7 = vmul.f32 1.442695, %v396_v63  ;;  %v383_v5 = vrot.slane %v350_v44, %v382_v1  ;;  %v398_v8 = vsub.f32 %v288_v30, %v379_v3 }
 0x26f   :  { %1094 = vpow2.f32 %v400_v53  ;;  %v410_v9 = vmul.f32 1.442695, %v397_v6 }
 0x270   :  { %1096 = vpow2.f32 %v402_v54  ;;  %v399_v12 = vsub.f32 %v289_v33, %v383_v5  ;;  %v412_v13 = vmul.f32 1.442695, %v398_v8 }
 0x271   :  { %1098 = vpow2.f32 %v404_v58 }
 0x272   :  { %1100 = vpow2.f32 %v406_v0  ;;  %v414_v15 = vmul.f32 1.442695, %v399_v12  ;;  %v650_v12 = vld [vmem:[#allocation8 + $0x68] sm:$0xff] }
 0x273   :  { %1102 = vpow2.f32 %v408_v7 }
 0x274   :  { %1104 = vpow2.f32 %v410_v9 }
 0x275   :  { %1106 = vpow2.f32 %v412_v13 }
 0x276   :  { %1108 = vpow2.f32 %v414_v15  ;;  %v648_v15 = vld [vmem:[#allocation8 + $0x58] sm:$0xff] }
 0x27c   :  { %v1095_v10 = vpop.eup %1094 }
 0x27d   :  { %v1097_v11 = vpop.eup %1096  ;;  %425 = vperm.xlu1 %1076, %v1095_v10  }
 0x27e   :  { %428 = vperm.xlu0 %1077, %v1097_v11   ;;  %v1099_v14 = vpop.eup %1098 }
 0x27f   :  { %v1101_v16 = vpop.eup %1100 }
 0x280   :  { %v1103_v24 = vpop.eup %1102 }
 0x281   :  { %431 = vperm.xlu1 %1076, %v1099_v14   ;;  %v1105_v25 = vpop.eup %1104 }
 0x282   :  { %v1414_v26 = vpop.eup %1106 }
 0x283   :  { %v1417_v27 = vpop.eup %1108 }
 0x285   :  { %434 = vperm.xlu1 %1076, %v1101_v16  }
 0x289   :  { %437 = vperm.xlu1 %1076, %v1103_v24  }
 0x28d   :  { %440 = vperm.xlu1 %1076, %v1105_v25  }
 0x291   :  { %443 = vperm.xlu1 %1076, %v1414_v26  }
 0x295   :  { %446 = vperm.xlu1 %1076, %v1417_v27  }
 0x2f8   :  { %v426_v28 = vpop.permute.xlu1 %425 }
 0x2f9   :  { %v429_v32 = vpop.permute.xlu0 %428  ;;  %v451_v35 = vrot.slane %v426_v28, %v1368_v2  ;;  %v640_v28 = vld [vmem:[#allocation8 + $0x18] sm:$0xff] }
 0x2fa   :  { %v455_v34 = vrot.slane %v429_v32, %v1368_v2 }
 0x2fc   :  { %v432_v29 = vpop.permute.xlu1 %431  ;;  %v480_v44 = vsel %vm332_vm0, %v455_v34, %v451_v35 }
 0x2fd   :  { %v459_v36 = vrot.slane %v432_v29, %v1368_v2  ;;  %v639_v29 = vld [vmem:[#allocation8 + $0x10] sm:$0xff] }
 0x2ff   :  { %v481_v46 = vsel %vm334_vm1, %v459_v36, %v480_v44 }
 0x300   :  { %v435_v30 = vpop.permute.xlu1 %434 }
 0x301   :  { %v463_v37 = vrot.slane %v435_v30, %v1368_v2  ;;  %v638_v30 = vld [vmem:[#allocation8 + $0x8] sm:$0xff] }
 0x303   :  { %v482_v49 = vsel %vm336_vm2, %v463_v37, %v481_v46 }
 0x304   :  { %v438_v31 = vpop.permute.xlu1 %437 }
 0x305   :  { %v467_v38 = vrot.slane %v438_v31, %v1368_v2  ;;  %v637_v31 = vld [vmem:[#allocation8] sm:$0xff] }
 0x307   :  { %v483_v50 = vsel %vm338_vm3, %v467_v38, %v482_v49 }
 0x308   :  { %v441_v33 = vpop.permute.xlu1 %440 }
 0x309   :  { %v471_v45 = vrot.slane %v441_v33, %v1368_v2 }
 0x30b   :  { %v484_v52 = vsel %vm340_vm4, %v471_v45, %v483_v50 }
 0x30c   :  { %v444_v39 = vpop.permute.xlu1 %443 }
 0x30d   :  { %v475_v47 = vrot.slane %v444_v39, %v1368_v2 }
 0x30f   :  { %v485_v54 = vsel %vm342_vm5, %v475_v47, %v484_v52 }
 0x310   :  { %v447_v51 = vpop.permute.xlu1 %446 }
 0x311   :  { %v479_v53 = vrot.slane %v447_v51, %v1368_v2 }
 0x313   :  { %v486_v56 = vsel %vm344_vm6, %v479_v53, %v485_v54 }
 0x314   :  { %v488_v57 = vsel %vm347_vm7, %v486_v56, 0.0 }
 0x315   :  { %489 = vadd.xlane.f32.xlu1 %v488_v57 }
 0x39e   :  { %v490_v58 = vpop.xlane.xlu1 %489 }
 0x39f   :  { %1110 = vrcp.f32 %v490_v58 }
 0x3ac   :  { %v1111_v62 = vpop.eup %1110 }
 0x3ad   :  { %v496_v63 = vrot.slane %v1111_v62, %v354_v40  ;;  %v500_v3 = vrot.slane %v1111_v62, %v358_v41  ;;  %v504_v2 = vrot.slane %v1111_v62, %v362_v42  ;;  %v508_v5 = vrot.slane %v1111_v62, %v366_v43  ;;  %v651_v42 = vld [vmem:[#allocation8 + $0x70] sm:$0xff] }
 0x3ae   :  { %v512_v9 = vrot.slane %v1111_v62, %v370_v48  ;;  %v516_v41 = vrot.slane %v1111_v62, %v374_v55  ;;  %v520_v48 = vrot.slane %v1111_v62, %v378_v59  ;;  %v649_v55 = vld [vmem:[#allocation8 + $0x60] sm:$0xff]  ;;  %v647_v59 = vld [vmem:[#allocation8 + $0x50] sm:$0xff] }
 0x3af   :  { %v533_v0 = vmul.f32 %v1095_v10, %v496_v63  ;;  %v534_v6 = vmul.f32 %v1097_v11, %v500_v3  ;;  %v535_v7 = vmul.f32 %v1099_v14, %v504_v2  ;;  %v536_v8 = vmul.f32 %v1101_v16, %v508_v5  ;;  %v652_v11 = vld [vmem:[#allocation8 + $0x78] sm:$0xff] }
 0x3b0   :  { %v537_v40 = vmul.f32 %v1103_v24, %v512_v9  ;;  %v1265_v10 = vmov 0.0   ;;  %v538_v43 = vmul.f32 %v1105_v25, %v516_v41  ;;  %v539_v13 = vmul.f32 %v1414_v26, %v520_v48  ;;  %v646_v24 = vld [vmem:[#allocation8 + $0x48] sm:$0xff]  ;;  %v643_v25 = vld [vmem:[#allocation8 + $0x30] sm:$0xff] }
 0x3b1   :  { %543 = vperm.xlu0 %1077, %v533_v0   ;;  %994 = vmatprep.subr.mxu1 %v1265_v10  ;;  %v524_v14 = vrot.slane %v1111_v62, %v382_v1  ;;  %v644_v1 = vld [vmem:[#allocation8 + $0x38] sm:$0xff]  ;;  %v642_v26 = vld [vmem:[#allocation8 + $0x28] sm:$0xff] }
 0x3b2   :  { %1029 = vmatprep.subr.mxu0 %v1265_v10  ;;  %995 = vmatpush3.msra.mxu1 %v652_v11 }
 0x3b3   :  { %996 = vmatprep.subr.mxu1 %v1265_v10  ;;  %v540_v16 = vmul.f32 %v1417_v27, %v524_v14  ;;  %v641_v27 = vld [vmem:[#allocation8 + $0x20] sm:$0xff]  ;;  %1026 = vmatprep.mubr.msk.f32.mxu1 %vm1266_vm8, %v1265_v10 }
 0x3b4   :  { %997 = vmatpush3.msra.mxu1 %v651_v42  ;;  %1061 = vmatprep.mubr.msk.f32.mxu0 %vm1266_vm8, %v1265_v10 }
 0x3b5   :  { %548 = vperm.xlu0 %1077, %v534_v6   ;;  %998 = vmatprep.subr.mxu1 %v1265_v10 }
 0x3b6   :  { %999 = vmatpush3.msra.mxu1 %v650_v12 }
 0x3b7   :  { %1000 = vmatprep.subr.mxu1 %v1265_v10 }
 0x3b8   :  { %1001 = vmatpush3.msra.mxu1 %v649_v55 }
 0x3b9   :  { %553 = vperm.xlu0 %1077, %v535_v7   ;;  %1002 = vmatprep.subr.mxu1 %v1265_v10 }
 0x3ba   :  { %1003 = vmatpush3.msra.mxu1 %v648_v15 }
 0x3bb   :  { %1004 = vmatprep.subr.mxu1 %v1265_v10 }
 0x3bc   :  { %1005 = vmatpush3.msra.mxu1 %v647_v59 }
 0x3bd   :  { %558 = vperm.xlu0 %1077, %v536_v8   ;;  %1006 = vmatprep.subr.mxu1 %v1265_v10 }
 0x3be   :  { %1007 = vmatpush3.msra.mxu1 %v646_v24 }
 0x3bf   :  { %1008 = vmatprep.subr.mxu1 %v1265_v10 }
 0x3c0   :  { %1009 = vmatpush3.msra.mxu1 %v645_v61 }
 0x3c1   :  { %563 = vperm.xlu0 %1077, %v537_v40   ;;  %1010 = vmatprep.subr.mxu1 %v1265_v10 }
 0x3c2   :  { %1011 = vmatpush3.msra.mxu1 %v644_v1 }
 0x3c3   :  { %1012 = vmatprep.subr.mxu1 %v1265_v10 }
 0x3c4   :  { %1013 = vmatpush3.msra.mxu1 %v643_v25 }
 0x3c5   :  { %568 = vperm.xlu0 %1077, %v538_v43   ;;  %1014 = vmatprep.subr.mxu1 %v1265_v10 }
 0x3c6   :  { %1015 = vmatpush3.msra.mxu1 %v642_v26 }
 0x3c7   :  { %1016 = vmatprep.subr.mxu1 %v1265_v10 }
 0x3c8   :  { %1017 = vmatpush3.msra.mxu1 %v641_v27 }
 0x3c9   :  { %573 = vperm.xlu0 %1077, %v539_v13   ;;  %1018 = vmatprep.subr.mxu1 %v1265_v10 }
 0x3ca   :  { %1019 = vmatpush3.msra.mxu1 %v640_v28 }
 0x3cb   :  { %1020 = vmatprep.subr.mxu1 %v1265_v10 }
 0x3cc   :  { %1021 = vmatpush3.msra.mxu1 %v639_v29 }
 0x3cd   :  { %578 = vperm.xlu0 %1077, %v540_v16   ;;  %1022 = vmatprep.subr.mxu1 %v1265_v10 }
 0x3ce   :  { %1023 = vmatpush3.msra.mxu1 %v638_v30 }
 0x3cf   :  { %1024 = vmatprep.subr.mxu1 %v1265_v10 }
 0x3d0   :  { %1025 = vmatpush3.msra.mxu1 %v637_v31 }
 0x42c   :  { %v544_v32 = vpop.permute.xlu0 %543 }
 0x42d   :  { %v581_v37 = vmul.f32 %v544_v32, %v1338_v4 }
 0x42f   :  { %v589_v46 = vrot.slane %v581_v37, 4 }
 0x430   :  { %v549_v33 = vpop.permute.xlu0 %548 }
 0x431   :  { %v582_v35 = vmul.f32 %v549_v33, %v1341_v17  ;;  %v590_v53 = vadd.f32 %v589_v46, %v581_v37 }
 0x433   :  { %v595_v39 = vrot.slane %v582_v35, 4  ;;  %v591_v62 = vrot.slane %v590_v53, 2 }
 0x434   :  { %v554_v34 = vpop.permute.xlu0 %553 }
 0x435   :  { %v583_v36 = vmul.f32 %v554_v34, %v1343_v18  ;;  %v596_v50 = vadd.f32 %v595_v39, %v582_v35  ;;  %v592_v5 = vadd.f32 %v591_v62, %v590_v53  ;;  %v782_v62 = vld [vmem:[#allocation9 + $0x48] sm:$0xff] }
 0x437   :  { %v601_v45 = vrot.slane %v583_v36, 4  ;;  %v597_v57 = vrot.slane %v596_v50, 2  ;;  %v593_v55 = vrot.slane %v592_v5, 1 }
 0x438   :  { %v559_v38 = vpop.permute.xlu0 %558 }
 0x439   :  { %v584_v44 = vmul.f32 %v559_v38, %v1347_v19  ;;  %v602_v52 = vadd.f32 %v601_v45, %v583_v36  ;;  %v598_v6 = vadd.f32 %v597_v57, %v596_v50  ;;  %v594_v25 = vadd.f32 %v593_v55, %v592_v5  ;;  %v887_v45 = vld [vmem:[#allocation11 + $0x2] ss:$0 sm:$0xff]  ;;  %v788_v50 = vld [vmem:[#allocation9 + $0x78] sm:$0xff]  ;;  %v786_v57 = vld [vmem:[#allocation9 + $0x68] sm:$0xff] }
 0x43a   :  { %1030 = vmatpush3.msra.mxu0 %v788_v50 }
 0x43b   :  { %v607_v47 = vrot.slane %v584_v44, 4  ;;  %v603_v58 = vrot.slane %v602_v52, 2  ;;  %v599_v42 = vrot.slane %v598_v6, 1  ;;  %1031 = vmatprep.subr.mxu0 %v1265_v10 }
 0x43c   :  { %v564_v49 = vpop.permute.xlu0 %563 }
 0x43d   :  { %v585_v51 = vmul.f32 %v564_v49, %v1349_v20  ;;  %v608_v54 = vadd.f32 %v607_v47, %v584_v44  ;;  %v604_v20 = vadd.f32 %v603_v58, %v602_v52  ;;  %v600_v16 = vadd.f32 %v599_v42, %v598_v6  ;;  %v783_v58 = vld [vmem:[#allocation9 + $0x50] sm:$0xff]  ;;  %v776_v6 = vld [vmem:[#allocation9 + $0x18] sm:$0xff]  ;;  %v889_v42 = vld [vmem:[#allocation11 + $0x4] ss:$0 sm:$0xff] }
 0x43f   :  { %v613_v56 = vrot.slane %v585_v51, 4  ;;  %v609_v63 = vrot.slane %v608_v54, 2  ;;  %v605_v12 = vrot.slane %v604_v20, 1  ;;  %v665_v30 = vsel %vm332_vm0, %v600_v16, %v594_v25 }
 0x440   :  { %v569_v17 = vpop.permute.xlu0 %568 }
 0x441   :  { %v614_v18 = vadd.f32 %v613_v56, %v585_v51  ;;  %v586_v4 = vmul.f32 %v569_v17, %v1353_v21  ;;  %v610_v8 = vadd.f32 %v609_v63, %v608_v54  ;;  %v606_v1 = vadd.f32 %v605_v12, %v604_v20  ;;  %v787_v51 = vld [vmem:[#allocation9 + $0x70] sm:$0xff]  ;;  %v780_v63 = vld [vmem:[#allocation9 + $0x38] sm:$0xff]  ;;  %v773_v20 = vld [vmem:[#allocation9] sm:$0xff] }
 0x442   :  { %1032 = vmatpush3.msra.mxu0 %v787_v51 }
 0x443   :  { %v619_v19 = vrot.slane %v586_v4, 4  ;;  %v615_v0 = vrot.slane %v614_v18, 2  ;;  %v611_v13 = vrot.slane %v610_v8, 1  ;;  %v666_v32 = vsel %vm334_vm1, %v606_v1, %v665_v30  ;;  %1033 = vmatprep.subr.mxu0 %v1265_v10 }
 0x444   :  { %v574_v3 = vpop.permute.xlu0 %573  ;;  %1034 = vmatpush3.msra.mxu0 %v786_v57 }
 0x445   :  { %v620_v2 = vadd.f32 %v619_v19, %v586_v4  ;;  %v587_v7 = vmul.f32 %v574_v3, %v1355_v22  ;;  %v616_v41 = vadd.f32 %v615_v0, %v614_v18  ;;  %v612_v26 = vadd.f32 %v611_v13, %v610_v8  ;;  %v785_v18 = vld [vmem:[#allocation9 + $0x60] sm:$0xff]  ;;  %1035 = vmatprep.subr.mxu0 %v1265_v10  ;;  %v784_v4 = vld [vmem:[#allocation9 + $0x58] sm:$0xff]  ;;  %v779_v19 = vld [vmem:[#allocation9 + $0x30] sm:$0xff] }
 0x446   :  { %1036 = vmatpush3.msra.mxu0 %v785_v18  ;;  %v778_v0 = vld [vmem:[#allocation9 + $0x28] sm:$0xff]  ;;  %v777_v3 = vld [vmem:[#allocation9 + $0x20] sm:$0xff] }
 0x447   :  { %v621_v9 = vrot.slane %v620_v2, 2  ;;  %v625_v40 = vrot.slane %v587_v7, 4  ;;  %v617_v59 = vrot.slane %v616_v41, 1  ;;  %v667_v35 = vsel %vm336_vm2, %v612_v26, %v666_v32  ;;  %1037 = vmatprep.subr.mxu0 %v1265_v10 }
 0x448   :  { %v579_v11 = vpop.permute.xlu0 %578  ;;  %1038 = vmatpush3.msra.mxu0 %v784_v4 }
 0x449   :  { %v622_v43 = vadd.f32 %v621_v9, %v620_v2  ;;  %v626_v21 = vadd.f32 %v625_v40, %v587_v7  ;;  %v588_v48 = vmul.f32 %v579_v11, %v1359_v23  ;;  %v618_v29 = vadd.f32 %v617_v59, %v616_v41  ;;  %1039 = vmatprep.subr.mxu0 %v1265_v10  ;;  %v775_v2 = vld [vmem:[#allocation9 + $0x10] sm:$0xff]  ;;  %v774_v7 = vld [vmem:[#allocation9 + $0x8] sm:$0xff]  ;;  %v888_v41 = vld [vmem:[#allocation11 + $0x3] ss:$0 sm:$0xff] }
 0x44a   :  { %1040 = vmatpush3.msra.mxu0 %v783_v58 }
 0x44b   :  { %v627_v14 = vrot.slane %v626_v21, 2  ;;  %v631_v15 = vrot.slane %v588_v48, 4  ;;  %v623_v22 = vrot.slane %v622_v43, 1  ;;  %v668_v36 = vsel %vm338_vm3, %v618_v29, %v667_v35  ;;  %1041 = vmatprep.subr.mxu0 %v1265_v10 }
 0x44c   :  { %1042 = vmatpush3.msra.mxu0 %v782_v62 }
 0x44d   :  { %v628_v24 = vadd.f32 %v627_v14, %v626_v21  ;;  %v632_v61 = vadd.f32 %v631_v15, %v588_v48  ;;  %v624_v31 = vadd.f32 %v623_v22, %v622_v43  ;;  %1043 = vmatprep.subr.mxu0 %v1265_v10  ;;  %v770_v21 = vstv %s890_s28 }
 0x44e   :  { %1044 = vmatpush3.msra.mxu0 %v781_v60 }
 0x44f   :  { %v629_v27 = vrot.slane %v628_v24, 1  ;;  %v633_v28 = vrot.slane %v632_v61, 2  ;;  %v669_v38 = vsel %vm340_vm4, %v624_v31, %v668_v36  ;;  %1045 = vmatprep.subr.mxu0 %v1265_v10 }
 0x450   :  { %1046 = vmatpush3.msra.mxu0 %v780_v63 }
 0x451   :  { %v634_v23 = vadd.f32 %v633_v28, %v632_v61  ;;  %v630_v33 = vadd.f32 %v629_v27, %v628_v24  ;;  %1047 = vmatprep.subr.mxu0 %v1265_v10 }
 0x452   :  { %1048 = vmatpush3.msra.mxu0 %v779_v19 }
 0x453   :  { %v635_v34 = vrot.slane %v634_v23, 1  ;;  %v670_v39 = vsel %vm342_vm5, %v630_v33, %v669_v38  ;;  %1049 = vmatprep.subr.mxu0 %v1265_v10 }
 0x454   :  { %1050 = vmatpush3.msra.mxu0 %v778_v0 }
 0x455   :  { %v636_v37 = vadd.f32 %v635_v34, %v634_v23  ;;  %1051 = vmatprep.subr.mxu0 %v1265_v10 }
 0x456   :  { %1052 = vmatpush3.msra.mxu0 %v777_v3 }
 0x457   :  { %v671_v44 = vsel %vm344_vm6, %v636_v37, %v670_v39  ;;  %1053 = vmatprep.subr.mxu0 %v1265_v10 }
 0x458   :  { %1027 = vmatmul.mubr.f32.vlgmr.msra.gmra.mxu1 %v671_v44  ;;  %1054 = vmatpush3.msra.mxu0 %v776_v6 }
 0x459   :  { %1055 = vmatprep.subr.mxu0 %v1265_v10 }
 0x45a   :  { %1056 = vmatpush3.msra.mxu0 %v775_v2 }
 0x45b   :  { %1057 = vmatprep.subr.mxu0 %v1265_v10 }
 0x45c   :  { %1058 = vmatpush3.msra.mxu0 %v774_v7 }
 0x45d   :  { %1059 = vmatprep.subr.mxu0 %v1265_v10  ;;  %v891_v10 = vld [vmem:[%s1515_s5] ss:$0 sm:$0xff] }
 0x45e   :  { %1060 = vmatpush3.msra.mxu0 %v773_v20 }
 0x518   :  { %v739_v46 = vpop.f32.mrf.mxu1 }
 0x519   :  { %v740_v47 = vadd.f32 %v887_v45, %v739_v46 }
 0x51a   :  { %v1028_v49 = vpop.f32.mrf.mxu1 }
 0x51b   :  { %743 = vadd.xlane.f32.xlu1 %v740_v47 }
 0x5a4   :  { %v744_v52 = vpop.xlane.xlu1 %743 }
 0x5a5   :  { %v745_v53 = vmul.f32 0.03125, %v744_v52 }
 0x5a7   :  { %v747_v54 = vsub.f32 %v740_v47, %v745_v53 }
 0x5a9   :  { %v750_v56 = vsel %vm746_vm9, %v747_v54, 0.0 }
 0x5aa   :  { %v751_v17 = vmul.f32 %v750_v56, %v750_v56 }
 0x5ac   :  { %752 = vadd.xlane.f32.xlu0 %v751_v17 }
 0x635   :  { %v753_v5 = vpop.xlane.xlu0 %752 }
 0x636   :  { %v754_v8 = vmul.f32 0.03125, %v753_v5 }
 0x638   :  { %v755_v9 = vadd.f32 1e-05, %v754_v8 }
 0x63a   :  { %1112 = vrsqrt.f32 %v755_v9 }
 0x647   :  { %v1113_v40 = vpop.eup %1112 }
 0x648   :  { %v757_v11 = vmul.f32 %v1113_v40, %v750_v56 }
 0x64a   :  { %v762_v43 = vmul.f32 %v888_v41, %v757_v11 }
 0x64c   :  { %v767_v48 = vadd.f32 %v889_v42, %v762_v43 }
 0x64e   :  { %vm769_vm10 = vcmp.ge.f32.partialorder %v767_v48, 0.0  ;;  %v771_v12 = vmul.f32 %v770_v21, %v767_v48 }
 0x650   :  { %v772_v55 = vsel %vm769_vm10, %v767_v48, %v771_v12 }
 0x651   :  { %1062 = vmatmul.mubr.f32.vlgmr.msra.gmra.mxu0 %v772_v55 }
 0x711   :  { %v862_v13 = vpop.f32.mrf.mxu0 }
 0x712   :  { %v863_v14 = vadd.f32 %v891_v10, %v862_v13 }
 0x713   :  { %v1063_v15 = vpop.f32.mrf.mxu0 }
 0x714   :  { %866 = vst [vmem:[#allocation13] sm:$0xff] %v863_v14 }
 0x715   :  { %1237 = shalt.err (!%p1234_p6)
}
 0x716   :  { %876 = dma.vmem_to_hbm [thread:$0]  %s874_s9, 128, %s1517_s7, [#allocation4]  }
 0x717   :  { %1254 = dma.done.wait [#allocation4], 128  }
 0x718   :  { %1255 = vsyncadd [#allocation4], 4294967168 }
 0x719   :  { %880 = vsyncpa [#allocation3], 1 }
 0x71a   :  { %881 = vsyncpa [#allocation7], 1 }
 0x71b   :  { %882 = vsyncpa [#allocation10], 1 }
 0x71c   :  { %883 = vsyncpa [#allocation4], 1 }
 0x71d   :  { %884 = vsyncpa [#allocation5], 1 }

</bundles_post_ra>
